<compile_context>
chip_gen: v6e
topology: v6e:2x2x1
jax: 0.10.0
libtpu: 0.0.40
codegen_flags: <defaults>
</compile_context>

<pallas_src>
import functools

import jax
import jax.numpy as jnp
from jax.experimental import pallas as pl
from jax.experimental.pallas import tpu as pltpu


def rwkvcm_head_kernel(idx_ref, x_ref, gamma_ref, beta_ref,
                       wqk_ref, wh_ref,
                       logits_ref, hidden_ref,
                       xln_scr, c_scr,
                       *, eps, qk):
    v = pl.program_id(1)

    # ---------- per-batch-element work, done once at the first vocab tile ----------
    @pl.when(v == 0)
    def _():
        x = x_ref[0]                                             # (T, E) f32
        mean = jnp.mean(x, axis=-1, keepdims=True)
        xc = x - mean
        var = jnp.mean(xc * xc, axis=-1, keepdims=True)
        xln = xc * jax.lax.rsqrt(var + eps)
        xln = xln * gamma_ref[...] + beta_ref[...]               # (1,E) broadcasts
        hidden_ref[0] = xln.astype(hidden_ref.dtype)

        xln_bf = xln.astype(jnp.bfloat16)
        xln_scr[...] = xln_bf                                    # bf16 cache, reused per tile

        # Fused q|k projection: one MXU matmul on the concatenated weight.
        # The 1/qk_att scale is folded into the q half in the wrapper.
        qk_proj = jnp.dot(xln_bf, wqk_ref[...],
                          preferred_element_type=jnp.float32)    # (T, 2*QK)
        q = qk_proj[:, :qk].astype(jnp.bfloat16)
        k = qk_proj[:, qk:].astype(jnp.bfloat16)
        c = jax.lax.dot_general(q, k, (((1,), (1,)), ((), ())),
                                preferred_element_type=jnp.float32)  # (T, T)
        T = c.shape[0]
        rows = jax.lax.broadcasted_iota(jnp.int32, (T, T), 0)
        cols = jax.lax.broadcasted_iota(jnp.int32, (T, T), 1)
        # Causal copy mask; cache in bf16 (used only as an MXU operand below).
        c_scr[...] = jnp.where(rows >= cols, c, 0.0).astype(jnp.bfloat16)

    # ---------- per-(batch, vocab-tile) work ----------
    T = logits_ref.shape[1]
    tile_v = logits_ref.shape[2]

    idx_col = idx_ref[0]                                          # (T, 1) int32
    vocab_iota = v * tile_v + jax.lax.broadcasted_iota(jnp.int32, (T, tile_v), 1)
    onehot = (idx_col == vocab_iota).astype(jnp.bfloat16)         # (T, tile_v)

    copy_logits = jnp.dot(c_scr[...], onehot,
                          preferred_element_type=jnp.float32)     # (T, tile_v)
    logits = jnp.dot(xln_scr[...], wh_ref[...],
                     preferred_element_type=jnp.float32) + copy_logits
    logits_ref[0] = logits.astype(logits_ref.dtype)


def _choose_tile_v(V, target=2048, align=128):
    """Largest multiple of 128 that divides V and is <= target (else V itself)."""
    if V <= align:
        return V
    best = None
    t = align
    while t <= min(V, target):
        if V % t == 0:
            best = t
        t += align
    return best if best is not None else V


def rwkvcm_forward(idx, params, *, qk_att, context_length, eps=1e-5, tile_v=None):
    """RWKVCM forward. Embedding gather is plain-JAX glue; LayerNorm, q/k
    projections, causal copy-attention and the vocab-tiled head run in Pallas."""
    B, T = idx.shape
    assert T <= context_length, "Cannot forward, because len(input) > model ctx_len."
    assert qk_att > 0, "kernel implements the qk_attention > 0 head path"

    emb = params["emb"]                     # (V, E)
    V, E = emb.shape
    wq, wk, wh = params["wq"], params["wk"], params["wh"]
    QK = wq.shape[1]
    assert QK == qk_att

    if tile_v is None:
        tile_v = _choose_tile_v(V)
    assert V % tile_v == 0, "vocab must be divisible by the vocab tile"
    nv = V // tile_v

    # Embedding lookup (glue gather). RWKV block stack treated as identity
    # (see TODO(synk) at top of file); ln_out runs inside the kernel.
    x = emb[idx].astype(jnp.float32)                           # (B, T, E)

    idx3 = idx.astype(jnp.int32)[:, :, None]                   # (B, T, 1)
    gamma = params["ln_gamma"].astype(jnp.float32)[None, :]    # (1, E)
    beta = params["ln_beta"].astype(jnp.float32)[None, :]      # (1, E)

    # bf16 MXU operands; fold the 1/qk_att scale into the q half, fuse q|k.
    wqk_bf = jnp.concatenate(
        [wq * (1.0 / float(qk_att)), wk], axis=1).astype(jnp.bfloat16)   # (E, 2*QK)
    wh_bf = wh.astype(jnp.bfloat16)                                      # (E, V)

    kernel = functools.partial(rwkvcm_head_kernel, eps=eps, qk=QK)

    # VMEM budget: double-buffered tiles + scratch, with headroom; floor at the
    # default 32 MiB so small configs are unaffected, scale up for large ones.
    est = 2 * (T * 4                      # idx tile
               + T * E * 4                # x tile
               + 2 * E * 4                # gamma + beta
               + E * 2 * QK * 2           # fused q|k weight (bf16)
               + E * tile_v * 2           # wh tile (bf16)
               + T * tile_v * 4           # logits tile
               + T * E * 4)               # hidden tile
    est += T * E * 2 + T * T * 2          # xln / c scratch (bf16)
    vmem_bytes = max(32 * 1024 * 1024, int(est * 1.5))

    cost = pl.CostEstimate(
        flops=B * (4 * T * E * QK + 2 * T * T * QK + 2 * T * T * V + 2 * T * E * V),
        transcendentals=B * T,
        bytes_accessed=(idx3.size * 4 + x.size * 4 + 2 * E * 4
                        + E * 2 * QK * 2 + E * V * 2
                        + B * T * V * 4 + B * T * E * 4),
    )

    logits, hidden = pl.pallas_call(
        kernel,
        out_shape=(
            jax.ShapeDtypeStruct((B, T, V), jnp.float32),      # logits
            jax.ShapeDtypeStruct((B, T, E), jnp.float32),      # last_hidden_state
        ),
        grid_spec=pltpu.PrefetchScalarGridSpec(
            num_scalar_prefetch=0,
            grid=(B, nv),
            in_specs=[
                pl.BlockSpec((1, T, 1), lambda b, v: (b, 0, 0)),      # idx
                pl.BlockSpec((1, T, E), lambda b, v: (b, 0, 0)),      # x
                pl.BlockSpec((1, E), lambda b, v: (0, 0)),            # ln gamma
                pl.BlockSpec((1, E), lambda b, v: (0, 0)),            # ln beta
                pl.BlockSpec((E, 2 * QK), lambda b, v: (0, 0)),       # fused q|k weight
                pl.BlockSpec((E, tile_v), lambda b, v: (0, v)),       # head weight tile
            ],
            out_specs=[
                pl.BlockSpec((1, T, tile_v), lambda b, v: (b, 0, v)),  # logits tile
                pl.BlockSpec((1, T, E), lambda b, v: (b, 0, 0)),       # hidden
            ],
            scratch_shapes=[
                pltpu.VMEM((T, E), jnp.bfloat16),   # xln cache (bf16 MXU operand)
                pltpu.VMEM((T, T), jnp.bfloat16),   # masked copy scores cache
            ],
        ),
        compiler_params=pltpu.CompilerParams(
            dimension_semantics=("parallel", "arbitrary"),
            vmem_limit_bytes=vmem_bytes,
        ),
        cost_estimate=cost,
    )(idx3, x, gamma, beta, wqk_bf, wh_bf)
    return logits, hidden


def rwkvcm_reference(idx, params, *, qk_att, eps=1e-5):
    """Pure-JAX fp32 reference mirroring the PyTorch forward (blocks = identity)."""
    emb = params["emb"]
    V, E = emb.shape
    B, T = idx.shape
    x = emb[idx]
    mean = x.mean(-1, keepdims=True)
    var = ((x - mean) ** 2).mean(-1, keepdims=True)
    xln = (x - mean) / jnp.sqrt(var + eps) * params["ln_gamma"] + params["ln_beta"]
    hp = jax.lax.Precision.HIGHEST
    q = jnp.matmul(xln, params["wq"], precision=hp)
    k = jnp.matmul(xln, params["wk"], precision=hp)
    c = jnp.matmul(q, jnp.swapaxes(k, -1, -2), precision=hp) * (1.0 / qk_att)
    mask = jnp.tril(jnp.ones((T, T), jnp.float32))
    c = jnp.where(mask == 0, 0.0, c)
    onehot = jax.nn.one_hot(idx, V, dtype=jnp.float32)
    copy_logits = jnp.matmul(c, onehot, precision=hp)
    logits = jnp.matmul(xln, params["wh"], precision=hp) + copy_logits
    return logits, xln


if __name__ == "__main__":
    # Small, lane-aligned synthetic config: vocab=512, embed=128, qk_att=128,
    # ctx_len=8, vocab tile 128 (-> 4 vocab grid steps per batch element).
    B, T = 2, 8
    V, E, QK = 512, 128, 128
    CTX = 8
    TILE_V = 128

    key = jax.random.PRNGKey(0)
    k_emb, k_g, k_b, k_q, k_k, k_h, k_idx = jax.random.split(key, 7)
    params = {
        "emb": jax.random.normal(k_emb, (V, E), jnp.float32) * 0.1,
        "ln_gamma": 1.0 + 0.1 * jax.random.normal(k_g, (E,), jnp.float32),
        "ln_beta": 0.05 * jax.random.normal(k_b, (E,), jnp.float32),
        "wq": jax.random.normal(k_q, (E, QK), jnp.float32) * 0.1,
        "wk": jax.random.normal(k_k, (E, QK), jnp.float32) * 0.1,
        "wh": jax.random.normal(k_h, (E, V), jnp.float32) * 0.1,
    }
    idx = jax.random.randint(k_idx, (B, T), 0, V, dtype=jnp.int32)

    logits, hidden = rwkvcm_forward(idx, params, qk_att=QK, context_length=CTX,
                                    tile_v=TILE_V)
    logits = jax.block_until_ready(logits)
    hidden = jax.block_until_ready(hidden)

    ref_logits, ref_hidden = rwkvcm_reference(idx, params, qk_att=QK)
    # Precision contract: LayerNorm / hidden state in fp32; matmuls use bf16
    # operands with fp32 accumulation -> logits tolerance is bf16-level.
    if not jnp.allclose(hidden, ref_hidden, rtol=1e-3, atol=1e-3):
        raise AssertionError("hidden state mismatch vs reference")
    if not jnp.allclose(logits, ref_logits, rtol=2e-2, atol=3e-2):
        raise AssertionError("logits mismatch vs reference")

    print("KERNEL_OK")
</pallas_src>

<mosaic_0001>
module attributes {stable_mosaic.version = 11 : i64} {
  func.func @rwkvcm_head_kernel(%arg0: i32, %arg1: i32, %arg2: memref<1x8x1xi32, #tpu.memory_space<vmem>>, %arg3: memref<1x8x128xf32, #tpu.memory_space<vmem>>, %arg4: memref<1x128xf32, #tpu.memory_space<vmem>>, %arg5: memref<1x128xf32, #tpu.memory_space<vmem>>, %arg6: memref<128x256xbf16, #tpu.memory_space<vmem>>, %arg7: memref<128x128xbf16, #tpu.memory_space<vmem>>, %arg8: memref<1x8x128xf32, #tpu.memory_space<vmem>>, %arg9: memref<1x8x128xf32, #tpu.memory_space<vmem>>, %arg10: memref<8x128xbf16, #tpu.memory_space<vmem>>, %arg11: memref<8x8xbf16, #tpu.memory_space<vmem>>) attributes {dimension_semantics = [#tpu.dimension_semantics<parallel>, #tpu.dimension_semantics<arbitrary>], iteration_bounds = array<i64: 2, 4>, scalar_prefetch = 0 : i64, scratch_operands = 2 : i64, tpu.core_type = #tpu.core_type<tc>, window_params = [{transform_indices = @transform_0, window_bounds = array<i64: 1, 8, 1>}, {transform_indices = @transform_1, window_bounds = array<i64: 1, 8, 128>}, {pipeline_mode = #tpu.pipeline_mode<synchronous>, transform_indices = @transform_2, window_bounds = array<i64: 1, 128>}, {pipeline_mode = #tpu.pipeline_mode<synchronous>, transform_indices = @transform_3, window_bounds = array<i64: 1, 128>}, {pipeline_mode = #tpu.pipeline_mode<synchronous>, transform_indices = @transform_4, window_bounds = array<i64: 128, 256>}, {transform_indices = @transform_5, window_bounds = array<i64: 128, 128>}, {transform_indices = @transform_6, window_bounds = array<i64: 1, 8, 128>}, {transform_indices = @transform_7, window_bounds = array<i64: 1, 8, 128>}]} {
    %c0_i32 = arith.constant 0 : i32
    %0 = arith.cmpi eq, %arg1, %c0_i32 : i32
    %1 = arith.extui %0 : i1 to i32
    %c0_i32_0 = arith.constant 0 : i32
    %2 = arith.cmpi ne, %1, %c0_i32_0 : i32
    scf.if %2 {
      %c0_13 = arith.constant 0 : index
      %c0_14 = arith.constant 0 : index
      %c0_15 = arith.constant 0 : index
      %23 = vector.load %arg3[%c0_13, %c0_14, %c0_15] : memref<1x8x128xf32, #tpu.memory_space<vmem>>, vector<1x8x128xf32>
      %24 = vector.shape_cast %23 : vector<1x8x128xf32> to vector<8x128xf32>
      %cst_16 = arith.constant dense<0.000000e+00> : vector<8xf32>
      %25 = vector.multi_reduction <add>, %24, %cst_16 [1] : vector<8x128xf32> to vector<8xf32>
      %26 = vector.shape_cast %25 : vector<8xf32> to vector<8x1xf32>
      %cst_17 = arith.constant 1.280000e+02 : f32
      %27 = vector.broadcast %cst_17 : f32 to vector<8x1xf32>
      %28 = arith.divf %26, %27 : vector<8x1xf32>
      %29 = vector.broadcast %28 : vector<8x1xf32> to vector<8x128xf32>
      %30 = arith.subf %24, %29 : vector<8x128xf32>
      %31 = arith.mulf %30, %30 : vector<8x128xf32>
      %cst_18 = arith.constant dense<0.000000e+00> : vector<8xf32>
      %32 = vector.multi_reduction <add>, %31, %cst_18 [1] : vector<8x128xf32> to vector<8xf32>
      %33 = vector.shape_cast %32 : vector<8xf32> to vector<8x1xf32>
      %cst_19 = arith.constant 1.280000e+02 : f32
      %34 = vector.broadcast %cst_19 : f32 to vector<8x1xf32>
      %35 = arith.divf %33, %34 : vector<8x1xf32>
      %cst_20 = arith.constant 9.99999974E-6 : f32
      %36 = vector.broadcast %cst_20 : f32 to vector<8x1xf32>
      %37 = arith.addf %35, %36 : vector<8x1xf32>
      %38 = math.rsqrt %37 : vector<8x1xf32>
      %39 = vector.broadcast %38 : vector<8x1xf32> to vector<8x128xf32>
      %40 = arith.mulf %30, %39 : vector<8x128xf32>
      %c0_21 = arith.constant 0 : index
      %c0_22 = arith.constant 0 : index
      %41 = vector.load %arg4[%c0_21, %c0_22] : memref<1x128xf32, #tpu.memory_space<vmem>>, vector<1x128xf32>
      %42 = vector.broadcast %41 : vector<1x128xf32> to vector<8x128xf32>
      %43 = arith.mulf %40, %42 : vector<8x128xf32>
      %c0_23 = arith.constant 0 : index
      %c0_24 = arith.constant 0 : index
      %44 = vector.load %arg5[%c0_23, %c0_24] : memref<1x128xf32, #tpu.memory_space<vmem>>, vector<1x128xf32>
      %45 = vector.broadcast %44 : vector<1x128xf32> to vector<8x128xf32>
      %46 = arith.addf %43, %45 : vector<8x128xf32>
      %c0_25 = arith.constant 0 : index
      %c0_26 = arith.constant 0 : index
      %c0_27 = arith.constant 0 : index
      %47 = vector.load %arg9[%c0_25, %c0_26, %c0_27] : memref<1x8x128xf32, #tpu.memory_space<vmem>>, vector<1x8x128xf32>
      %48 = vector.shape_cast %47 : vector<1x8x128xf32> to vector<8x128xf32>
      %49 = vector.shape_cast %46 : vector<8x128xf32> to vector<1x8x128xf32>
      tpu.vector_store %arg9[%c0_25, %c0_26, %c0_27], %49 {strides = array<i32>} : memref<1x8x128xf32, #tpu.memory_space<vmem>>, vector<1x8x128xf32>,
      %50 = arith.truncf %46 : vector<8x128xf32> to vector<8x128xbf16>
      %c0_28 = arith.constant 0 : index
      %c0_29 = arith.constant 0 : index
      %51 = vector.load %arg10[%c0_28, %c0_29] : memref<8x128xbf16, #tpu.memory_space<vmem>>, vector<8x128xbf16>
      tpu.vector_store %arg10[%c0_28, %c0_29], %50 {strides = array<i32>} : memref<8x128xbf16, #tpu.memory_space<vmem>>, vector<8x128xbf16>,
      %c0_30 = arith.constant 0 : index
      %c0_31 = arith.constant 0 : index
      %52 = vector.load %arg6[%c0_30, %c0_31] : memref<128x256xbf16, #tpu.memory_space<vmem>>, vector<128x256xbf16>
      %cst_32 = arith.constant dense<0.000000e+00> : vector<8x256xf32>
      %53 = tpu.matmul %50, %52, %cst_32 {dimension_numbers = #tpu.dot_dimension_numbers<[1], [0], [0], [1], [0, 0, 1, 1], [], []>} : vector<8x128xbf16>, vector<128x256xbf16>, vector<8x256xf32> -> vector<8x256xf32>
      %54 = vector.extract_strided_slice %53 {offsets = [0, 0], sizes = [8, 128], strides = [1, 1]} : vector<8x256xf32> to vector<8x128xf32>
      %55 = arith.truncf %54 : vector<8x128xf32> to vector<8x128xbf16>
      %56 = vector.extract_strided_slice %53 {offsets = [0, 128], sizes = [8, 128], strides = [1, 1]} : vector<8x256xf32> to vector<8x128xf32>
      %57 = arith.truncf %56 : vector<8x128xf32> to vector<8x128xbf16>
      %cst_33 = arith.constant dense<0.000000e+00> : vector<8x8xf32>
      %58 = tpu.matmul %55, %57, %cst_33 {dimension_numbers = #tpu.dot_dimension_numbers<[1], [1], [0], [0], [0, 0, 1, 0], [], []>} : vector<8x128xbf16>, vector<8x128xbf16>, vector<8x8xf32> -> vector<8x8xf32>
      %59 = tpu.iota {dimensions = array<i32: 0>} : vector<8x8xi32>
      %60 = tpu.iota {dimensions = array<i32: 1>} : vector<8x8xi32>
      %61 = arith.cmpi sge, %59, %60 : vector<8x8xi32>
      %cst_34 = arith.constant 0.000000e+00 : f32
      %62 = vector.broadcast %cst_34 : f32 to vector<8x8xf32>
      %63 = arith.select %61, %58, %62 : vector<8x8xi1>, vector<8x8xf32>
      %64 = arith.truncf %63 : vector<8x8xf32> to vector<8x8xbf16>
      %c0_35 = arith.constant 0 : index
      %c0_36 = arith.constant 0 : index
      %65 = vector.load %arg11[%c0_35, %c0_36] : memref<8x8xbf16, #tpu.memory_space<vmem>>, vector<8x8xbf16>
      tpu.vector_store %arg11[%c0_35, %c0_36], %64 {strides = array<i32>} : memref<8x8xbf16, #tpu.memory_space<vmem>>, vector<8x8xbf16>,
    } else {
    }
    %c0 = arith.constant 0 : index
    %c0_1 = arith.constant 0 : index
    %c0_2 = arith.constant 0 : index
    %3 = vector.load %arg2[%c0, %c0_1, %c0_2] : memref<1x8x1xi32, #tpu.memory_space<vmem>>, vector<1x8x1xi32>
    %4 = vector.shape_cast %3 : vector<1x8x1xi32> to vector<8x1xi32>
    %c128_i32 = arith.constant 128 : i32
    %5 = arith.muli %arg1, %c128_i32 : i32
    %6 = tpu.iota {dimensions = array<i32: 1>} : vector<8x128xi32>
    %7 = vector.broadcast %5 : i32 to vector<8x128xi32>
    %8 = arith.addi %7, %6 : vector<8x128xi32>
    %9 = vector.broadcast %4 : vector<8x1xi32> to vector<8x128xi32>
    %10 = arith.cmpi eq, %9, %8 : vector<8x128xi32>
    %11 = arith.extui %10 : vector<8x128xi1> to vector<8x128xi32>
    %12 = arith.sitofp %11 : vector<8x128xi32> to vector<8x128xf32>
    %13 = arith.truncf %12 : vector<8x128xf32> to vector<8x128xbf16>
    %c0_3 = arith.constant 0 : index
    %c0_4 = arith.constant 0 : index
    %14 = vector.load %arg11[%c0_3, %c0_4] : memref<8x8xbf16, #tpu.memory_space<vmem>>, vector<8x8xbf16>
    %cst = arith.constant dense<0.000000e+00> : vector<8x128xf32>
    %15 = tpu.matmul %14, %13, %cst {dimension_numbers = #tpu.dot_dimension_numbers<[1], [0], [0], [1], [0, 0, 1, 1], [], []>} : vector<8x8xbf16>, vector<8x128xbf16>, vector<8x128xf32> -> vector<8x128xf32>
    %c0_5 = arith.constant 0 : index
    %c0_6 = arith.constant 0 : index
    %16 = vector.load %arg10[%c0_5, %c0_6] : memref<8x128xbf16, #tpu.memory_space<vmem>>, vector<8x128xbf16>
    %c0_7 = arith.constant 0 : index
    %c0_8 = arith.constant 0 : index
    %17 = vector.load %arg7[%c0_7, %c0_8] : memref<128x128xbf16, #tpu.memory_space<vmem>>, vector<128x128xbf16>
    %cst_9 = arith.constant dense<0.000000e+00> : vector<8x128xf32>
    %18 = tpu.matmul %16, %17, %cst_9 {dimension_numbers = #tpu.dot_dimension_numbers<[1], [0], [0], [1], [0, 0, 1, 1], [], []>} : vector<8x128xbf16>, vector<128x128xbf16>, vector<8x128xf32> -> vector<8x128xf32>
    %19 = arith.addf %18, %15 : vector<8x128xf32>
    %c0_10 = arith.constant 0 : index
    %c0_11 = arith.constant 0 : index
    %c0_12 = arith.constant 0 : index
    %20 = vector.load %arg8[%c0_10, %c0_11, %c0_12] : memref<1x8x128xf32, #tpu.memory_space<vmem>>, vector<1x8x128xf32>
    %21 = vector.shape_cast %20 : vector<1x8x128xf32> to vector<8x128xf32>
    %22 = vector.shape_cast %19 : vector<8x128xf32> to vector<1x8x128xf32>
    tpu.vector_store %arg8[%c0_10, %c0_11, %c0_12], %22 {strides = array<i32>} : memref<1x8x128xf32, #tpu.memory_space<vmem>>, vector<1x8x128xf32>,
    return
  }
  func.func @transform_0(%arg0: i32, %arg1: i32) -> (i32, i32, i32) {
    %c0_i32 = arith.constant 0 : i32
    %c0_i32_0 = arith.constant 0 : i32
    %c0_i32_1 = arith.constant 0 : i32
    return %arg0, %c0_i32, %c0_i32_0 : i32, i32, i32
  }
  func.func @transform_1(%arg0: i32, %arg1: i32) -> (i32, i32, i32) {
    %c0_i32 = arith.constant 0 : i32
    %c0_i32_0 = arith.constant 0 : i32
    %c0_i32_1 = arith.constant 0 : i32
    return %arg0, %c0_i32, %c0_i32_0 : i32, i32, i32
  }
  func.func @transform_2(%arg0: i32, %arg1: i32) -> (i32, i32) {
    %c0_i32 = arith.constant 0 : i32
    %c0_i32_0 = arith.constant 0 : i32
    %c0_i32_1 = arith.constant 0 : i32
    return %c0_i32, %c0_i32_0 : i32, i32
  }
  func.func @transform_3(%arg0: i32, %arg1: i32) -> (i32, i32) {
    %c0_i32 = arith.constant 0 : i32
    %c0_i32_0 = arith.constant 0 : i32
    %c0_i32_1 = arith.constant 0 : i32
    return %c0_i32, %c0_i32_0 : i32, i32
  }
  func.func @transform_4(%arg0: i32, %arg1: i32) -> (i32, i32) {
    %c0_i32 = arith.constant 0 : i32
    %c0_i32_0 = arith.constant 0 : i32
    %c0_i32_1 = arith.constant 0 : i32
    return %c0_i32, %c0_i32_0 : i32, i32
  }
  func.func @transform_5(%arg0: i32, %arg1: i32) -> (i32, i32) {
    %c0_i32 = arith.constant 0 : i32
    %c0_i32_0 = arith.constant 0 : i32
    return %c0_i32, %arg1 : i32, i32
  }
  func.func @transform_6(%arg0: i32, %arg1: i32) -> (i32, i32, i32) {
    %c0_i32 = arith.constant 0 : i32
    %c0_i32_0 = arith.constant 0 : i32
    return %arg0, %c0_i32, %arg1 : i32, i32, i32
  }
  func.func @transform_7(%arg0: i32, %arg1: i32) -> (i32, i32, i32) {
    %c0_i32 = arith.constant 0 : i32
    %c0_i32_0 = arith.constant 0 : i32
    %c0_i32_1 = arith.constant 0 : i32
    return %arg0, %c0_i32, %c0_i32_0 : i32, i32, i32
  }
}

</mosaic_0001>

<bundles_post_ra>
// kernel: tpu_custom_call.1
= control target key start
LH: loop header
LB: loop body
LE: loop exit
PB: predicated region body
PF: predicated region fallthrough
CT: control target
= control target key end

     0   :  { %s1866_s0 = inlined_call_operand.vmem [shape: s32[2,8,1], index: 0, kind: input, shape index: {}]   ;;  %s1867_s1 = inlined_call_operand.vmem [shape: f32[2,8,128], index: 1, kind: input, shape index: {}]   ;;  %s1868_s2 = inlined_call_operand.vmem [shape: f32[1,128], index: 2, kind: input, shape index: {}]   ;;  %s1869_s3 = inlined_call_operand.vmem [shape: f32[1,128], index: 3, kind: input, shape index: {}]   ;;  %s1870_s4 = inlined_call_operand.hbm [shape: bf16[128,256], index: 4, kind: input, shape index: {}]   ;;  %s1871_s5 = inlined_call_operand.hbm [shape: bf16[128,512], index: 5, kind: input, shape index: {}]   ;;  %s1872_s6 = inlined_call_operand.hbm [shape: f32[2,8,512], index: 6, kind: output, shape index: {0}]   ;;  %s1873_s7 = inlined_call_operand.hbm [shape: f32[2,8,128], index: 7, kind: output, shape index: {1}]  }
   0x1   :  { %1893 = sst [smem:[#allocation26_spill]] %s1867_s1 }
   0x2   :  { %1894 = sst [smem:[#allocation27_spill]] %s1868_s2 }
   0x3   :  { %1895 = sst [smem:[#allocation28_spill]] %s1869_s3 }
   0x4   :  { %1896 = sst [smem:[#allocation29_spill]] %s1870_s4 }
   0x5   :  { %1897 = sst [smem:[#allocation30_spill]] %s1872_s6 }
   0x6   :  { %1898 = sst [smem:[#allocation31_spill]] %s1873_s7 }
   0x7   :  { %13 = vsyncpa [#allocation5], 0 }
   0x8   :  { %14 = vsyncpa [#allocation8], 0 }
   0x9   :  { %16 = vsyncpa [#allocation8 + $0x1], 0 }
   0xa   :  { %17 = vsyncpa [#allocation6], 0 }
   0xb   :  { %19 = vsyncpa [#allocation6 + $0x1], 0 }
   0xc   :  { %20 = vsyncpa [#allocation11], 0 }
   0xd   :  { %22 = vsyncpa [#allocation11 + $0x1], 0  ;;  %s1521_s24 = smov 0   ;;  %s1523_s25 = smov 0  }
   0xe   :  { %s1525_s26 = smov 0   ;;  %s1527_s27 = smov 0  }
   0xf   :  { %s1529_s28 = smov 0   ;;  %s1531_s29 = smov 0  }
  0x10   :  { %s1533_s30 = smov 0   ;;  %s1535_s8 = smov 0  }
  0x11   :  { %s1537_s9 = smov 0   ;;  %s1539_s10 = smov 0  }
  0x12   :  { %s1541_s11 = smov 0   ;;  %s1543_s12 = smov 0  }
  0x13   :  { %s1545_s13 = smov 0   ;;  %s1547_s14 = smov 0  }
  0x14 LB: > { %1899 = sst [smem:[#allocation16_spill]] %s1412_s24  ;;  %s948_s15 = sadd.s32 4294967295, %s1464_s14   ;;  %s1464_s14 = sphi %s1547_s14, %s28_s14   ;;  %s1460_s13 = sphi %s1545_s13, %s1961_s13   ;;  %s1456_s12 = sphi %s1543_s12, %s1960_s12   ;;  %s1452_s11 = sphi %s1541_s11, %s1959_s11   ;;  %s1448_s10 = sphi %s1539_s10, %s1947_s10   ;;  %s1444_s9 = sphi %s1537_s9, %s1958_s9   ;;  %s1440_s8 = sphi %s1535_s8, %s1957_s8   ;;  %s1436_s30 = sphi %s1533_s30, %s1956_s30   ;;  %s1432_s29 = sphi %s1531_s29, %s1955_s29   ;;  %s1428_s28 = sphi %s1529_s28, %s1954_s28   ;;  %s1424_s27 = sphi %s1527_s27, %s1953_s27   ;;  %s1420_s26 = sphi %s1525_s26, %s1952_s26   ;;  %s1416_s25 = sphi %s1523_s25, %s1951_s25   ;;  %s1412_s24 = sphi %s1521_s24, %s1950_s24  }
  0x15   : > { %1900 = sst [smem:[#allocation17_spill]] %s1424_s27  ;;  %s949_s16 = sadd.s32 4294967294, %s1464_s14  }
  0x16   : > { %1901 = sst [smem:[#allocation18_spill]] %s1448_s10  ;;  %p169_p0 = scmp.ne.s32.totalorder %s1444_s9, %s1440_s8 }
  0x17   : > { %1902 = sst [smem:[#allocation19_spill]] %s1456_s12  ;;  %p170_p1 = scmp.eq.s32.totalorder %s1464_s14, 0 }
  0x18   : > { %1903 = sst [smem:[#allocation20_spill]] %s1464_s14  ;;  %p175_p2 = scmp.ne.s32.totalorder %s1440_s8, %s1436_s30 }
  0x19   : > { %p1596_p3 = scmp.eq.s32.totalorder %s948_s15, 0  ;;  %p1601_p4 = por %p170_p1, %p169_p0 }
  0x1a   : > { %p200_p5 = scmp.ne.s32.totalorder %s1432_s29, %s1428_s28  ;;  %p201_p7 = scmp.eq.s32.totalorder %s948_s15, 7 }
  0x1b   : > { %p1609_p6 = por %p1596_p3, %p175_p2  ;;  %p206_p8 = scmp.ne.s32.totalorder %s1428_s28, %s1424_s27 }
  0x1c   : > { %p207_p9 = scmp.eq.s32.totalorder %s949_s16, 7  ;;  %p1615_p10 = por %p201_p7, %p200_p5 }
  0x1d   : > { %s1906_s21 = scalar_select %p1609_p6, 1, 0 }
  0x1e   : > { %s1907_s22 = scalar_select %p1615_p10, 1, 0 }
  0x1f   : > { %p1620_p11 = por %p207_p9, %p206_p8  ;;  %p226_p12 = scmp.ne.s32.totalorder %s1420_s26, %s1416_s25 }
  0x20   : > { %1908 = sst [smem:[#allocation21_spill]] %s1907_s22  ;;  %p232_p13 = scmp.ne.s32.totalorder %s1416_s25, %s1412_s24 }
  0x21   : > { %s1909_s30 = scalar_select %p1620_p11, 1, 0 }
  0x22   : > { %p950_p0 = scmp.ge.s32.totalorder %s1464_s14, 1  ;;  %p1629_p1 = por %p226_p12, %p201_p7 }
  0x23   : > { %1910 = sst [smem:[#allocation22_spill]] %s1909_s30  ;;  %p240_p2 = scmp.lt.s32.totalorder %s1464_s14, 9 }
  0x24   : > { %s1911_s19 = scalar_select %p1629_p1, 1, 0 }
  0x25   : > { %p1634_p6 = por %p232_p13, %p207_p9  ;;  %p1638_p5 = pnand %p950_p0, %p240_p2 }
  0x26   : > { %1912 = sst [smem:[#allocation23_spill]] %s1911_s19  ;;  %s1466_s23 = smov [#allocation4]  }
  0x27   : > { %s1913_s15 = scalar_select %p1634_p6, 1, 0 }
  0x28   : > { %s258_s17 = sshll.u32 %s1466_s23, 4  ;;  %p1054_p8 = pneg %p1638_p5  ;;  %s259_s17 = int_to_ptr.vmem [resolvable:$true] %s258_s17 }
  0x29   : > { %1914 = sst [smem:[#allocation24_spill]] %s1913_s15  ;;  %p1070_p9 = scmp.lt.s32.totalorder %s1464_s14, 8 }
  0x2a   : > { %p1646_p7 = pnand %p1054_p8, %p1596_p3  ;;  %s1243_s30 = scalar_lea.vmem %s259_s17, 2048 }
  0x2b   : > { %p1653_p12 = pnand %p1070_p9, %p1601_p4  ;;  %p1244_p0 = scmp.ne.s32.totalorder %s259_s17, %s1243_s30 }
  0x2c   : > { %p1234_p13 = pneg %p1646_p7  ;;  %p1251_p11 = scmp.lt.s32.totalorder %s259_s17, %s259_s17 }
  0x2d   : > { %p1252_p10 = scmp.lt.s32.totalorder %s1243_s30, %s1243_s30 }
  0x2e   : > { %p1246_p2 = pnand %p1244_p0, %p1234_p13 }
  0x2f   : > { %p1253_p1 = por %p1252_p10, %p1251_p11 }
  0x30   : > { %p1247_p6 = pneg %p1246_p2 }
  0x32   : > { %p1254_p8 = pnand %p1253_p1, %p1247_p6 }
  0x34   : > { %1257 = shalt.err (!%p1254_p8)
}
  0x35   : > { %s1467_s23 = smov 128   ;;  %s1468_s20 = smov 8  }
  0x36   : > { %s1918_s4 = sld [smem:[#allocation29_spill]]  ;;  %s40_s30 = sadd.s32 1, %s1460_s13 }
  0x37   : > { %s37_s6 = sadd.s32 1, %s1456_s12  ;;  %s286_s22 = sand.u32 1, %s1444_s9  }
  0x38   : > { %p38_p4 = scmp.ge.s32.totalorder %s37_s6, 4  ;;  %s953_s7 = sshll.u32 %s286_s22, 6 }
  0x39   : > { %s954_s19 = sshll.u32 %s1456_s12, 6  ;;  %s1922_s1 = sadd.s32 1, %s1432_s29 }
  0x3a   : > { %s1963_s6 = smov (%p38_p4, %s37_s6), 0  ;;  %s1965_s30 = smov (!%p38_p4, %s40_s30), %s1460_s13 }
  0x3b   : > { %1919 = sst [smem:[#allocation25_spill]] %s1963_s6  ;;  %s159_s24 = ssub.s32 %s1456_s12, %s1963_s6 }
  0x3c   : > { %1057 = dma.hbm_to_vmem [thread:$0]  (!%p1646_p7), %s1918_s4, 2048, %s259_s17, [#allocation5], %s1467_s23, %s1467_s23, %s1468_s20  }
  0x3d   : > { %p42_p6 = scmp.ge.s32.totalorder %s1965_s30, 2  ;;  %p160_p10 = scmp.eq.s32.totalorder %s159_s24, 0 }
  0x3e   : > { %s1676_s17 = scalar_lea.hbm %s1871_s5, %s954_s19  ;;  %s290_s23 = scalar_lea.vmem [#allocation7], %s953_s7 }
  0x3f   : > { %s296_s20 = sshll.u32 %s290_s23, 4  ;;  %s1967_s30 = smov (%p42_p6, %s1965_s30), 0  ;;  %s297_s20 = int_to_ptr.vmem [resolvable:$true] %s296_s20 }
  0x40   : > { %s1920_s4 = sadd.s32 1, %s1444_s9  ;;  %s185_s2 = ssub.s32 %s1460_s13, %s1967_s30 }
  0x41   : > { %s1683_s3 = scalar_select %p160_p10, %s1444_s9, %s1920_s4  }
  0x42   : > { %s187_s10 = sor.u32 %s185_s2, %s159_s24  ;;  %p214_p11 = scmp.eq.s32.totalorder %s185_s2, 0 }
  0x43   : > { %p188_p1 = scmp.eq.s32.totalorder %s187_s10, 0  ;;  %s1921_s6 = sadd.s32 1, %s1420_s26 }
  0x44   : > { %s1690_s12 = scalar_select %p214_p11, %s1420_s26, %s1921_s6  }
  0x45   : > { %s1695_s27 = scalar_select %p188_p1, %s1432_s29, %s1922_s1  }
  0x46   : > { %s287_s19 = scalar_lea.sflag [#allocation8], %s286_s22  ;;  %p1260_p7 = pneg %p1653_p12 }
  0x47   : > { %s1271_s7 = scalar_lea.vmem %s297_s20, 1024  ;;  %s1469_s4 = smov [#allocation7]  }
  0x48   : > { %p1272_p9 = scmp.ne.s32.totalorder %s297_s20, %s1271_s7  ;;  %s1276_s14 = sshll.u32 %s1469_s4, 4  ;;  %s1277_s14 = int_to_ptr.vmem [resolvable:$false] %s1276_s14 }
  0x49   : > { %s1278_s23 = scalar_lea.vmem %s1277_s14, 2048  ;;  %p1279_p2 = scmp.lt.s32.totalorder %s297_s20, %s1277_s14 }
  0x4a   : > { %p1274_p13 = pnand %p1272_p9, %p1260_p7  ;;  %p1280_p8 = scmp.lt.s32.totalorder %s1278_s23, %s1271_s7 }
  0x4c   : > { %p1275_p0 = pneg %p1274_p13  ;;  %p1281_p4 = por %p1280_p8, %p1279_p2 }
  0x4e   : > { %p1282_p6 = pnand %p1281_p4, %p1275_p0 }
  0x50   : > { %1285 = shalt.err (!%p1282_p6)
}
  0x51   : > { %s1470_s2 = smov 256   ;;  %s1471_s1 = smov 64  }
  0x52   : > { %s1472_s6 = smov 4   ;;  %308 = sbr.rel (%p1638_p5) target bundleno = 1163 (0x48b), region = 44 }
  0x53   : > { %1061 = dma.hbm_to_vmem [thread:$0]  (!%p1653_p12), %s1676_s17, 1024, %s297_s20, %s287_s19, %s1470_s2, %s1471_s1, %s1472_s6  }
  0x57   : > { %1395 = dma.done.wait (%p1596_p3), [#allocation5], 2048  }
  0x58   : > { %1397 = vsyncadd (%p1596_p3), [#allocation5], 4294965248  ;;  %s314_s10 = sand.u32 1, %s1440_s8   ;;  %p1923_p10 = scmp.ne.s32.totalorder %s1906_s21, 0 }
  0x59   : > { %s957_s22 = sshll.u32 %s314_s10, 6  ;;  %s315_s24 = scalar_lea.sflag [#allocation8], %s314_s10 }
  0x5a   : > { %s1709_s7 = scalar_lea.vmem [#allocation7], %s957_s22 }
  0x5b   : > { %1399 = dma.done.wait (%p1923_p10), %s315_s24, 1024  }
  0x5c   : > { %1401 = vsyncadd (%p1923_p10), %s315_s24, 4294966272  ;;  %s1892_s18 = sand.u32 1, %s1428_s28   ;;  %s359_s15 = sand.u32 1, %s1416_s25  }
  0x5d   : > { %s1719_s16 = sshll.u32 %s1892_s18, 3  ;;  %s1723_s17 = sshll.u32 %s359_s15, 3 }
  0x5e   : > { %p362_p3 = scmp.lt.s32.totalorder %s1452_s11, 1  ;;  %s1924_s1 = sld [smem:[#allocation26_spill]] }
  0x5f   : > { %s361_s22 = scalar_lea.vmem [#allocation10], %s1723_s17  ;;  %s1925_s24 = sld [smem:[#allocation18_spill]] }
  0x60   : > { %s363_s20 = scalar_select %p362_p3, %s1452_s11, 1 }
  0x62   : > { %s960_s21 = sshll.u32 %s363_s20, 3 }
  0x63   : > { %s1730_s14 = scalar_lea.vmem %s1866_s0, %s960_s21 }
  0x64   : > { %s369_s6 = scalar_lea.vmem %s1924_s1, %s960_s21 }
  0x65   : > { %p962_p5 = scmp.ne.s32.totalorder %s1925_s24, 0 }
  0x66   : > { %s1926_s19 = sld [smem:[#allocation27_spill]] (!%p962_p5) }
  0x67   : > { %374 = sbr.rel (%p962_p5) target bundleno = 820 (0x334), region = 56  ;;  %s1927_s2 = sld [smem:[#allocation28_spill]] (!%p962_p5) }
  0x6c   : > { %v375_v0 = vld [vmem:[%s369_s6] sm:$0xff]  ;;  %v1200_v3 = vld [vmem:[#allocation4 + $0x64] ss:$8 sps:$4 sm:$0xff]   ;;  %v1202_v4 = vld [vmem:[#allocation4 + $0x60] ss:$8 sps:$4 sm:$0xff]   ;;  %v1473_v16 = vmov 0   ;;  %v586_v39 = vlaneseq }
  0x6d   : > { %376 = vadd.xlane.f32.xlu0 %v375_v0  ;;  %v1197_v1 = vld [vmem:[#allocation4 + $0x74] ss:$8 sps:$4 sm:$0xff]   ;;  %v1199_v2 = vld [vmem:[#allocation4 + $0x70] ss:$8 sps:$4 sm:$0xff]   ;;  %v1206_v11 = vld [vmem:[#allocation4 + $0x44] ss:$8 sps:$4 sm:$0xff]   ;;  %535 = vmatprep.mubr.bf16.mxu0 %v1473_v16 }
  0x6e   : > { %503 = vmatprep.subr.bf16.mxu0 %v1197_v1  ;;  %v1203_v9 = vld [vmem:[#allocation4 + $0x54] ss:$8 sps:$4 sm:$0xff]   ;;  %v1205_v10 = vld [vmem:[#allocation4 + $0x50] ss:$8 sps:$4 sm:$0xff]   ;;  %v1208_v12 = vld [vmem:[#allocation4 + $0x40] ss:$8 sps:$4 sm:$0xff]  }
  0x6f   : > { %504 = vmatpush1.bf16.msra.mxu0 %v1199_v2  ;;  %v1209_v13 = vld [vmem:[#allocation4 + $0x34] ss:$8 sps:$4 sm:$0xff]   ;;  %v1211_v14 = vld [vmem:[#allocation4 + $0x30] ss:$8 sps:$4 sm:$0xff]   ;;  %v1212_v15 = vld [vmem:[#allocation4 + $0x24] ss:$8 sps:$4 sm:$0xff]  }
  0x70   : > { %505 = vmatprep.subr.bf16.mxu0 %v1200_v3  ;;  %v1214_v17 = vld [vmem:[#allocation4 + $0x20] ss:$8 sps:$4 sm:$0xff]   ;;  %v1215_v18 = vld [vmem:[#allocation4 + $0x14] ss:$8 sps:$4 sm:$0xff]   ;;  %v1217_v19 = vld [vmem:[#allocation4 + $0x10] ss:$8 sps:$4 sm:$0xff]  }
  0x71   : > { %v1218_v20 = vld [vmem:[#allocation4 + $0x4] ss:$8 sps:$4 sm:$0xff]   ;;  %v1220_v21 = vld [vmem:[#allocation4] ss:$8 sps:$4 sm:$0xff]   ;;  %v963_v26 = vld [vmem:[%s1926_s19] ss:$0 sm:$0xff] }
  0x72   : > { %v964_v28 = vld [vmem:[%s1927_s2] ss:$0 sm:$0xff]  ;;  %v1474_v32 = vmov 0.0   ;;  %vm1475_vm0 = vmmov 0   ;;  %v587_v40 = vshrl.u32 %v586_v39, 7  ;;  %v589_v41 = vand.u32 127, %v586_v39 }
  0x73   : > { %506 = vmatpush1.bf16.msra.mxu0 %v1202_v4  ;;  %1012 = vmatprep.subr.bf16.mxu1 %v1474_v32  ;;  %vm593_vm2 = vcmask 60416  }
  0x74   : > { %507 = vmatprep.subr.bf16.mxu0 %v1203_v9  ;;  %1014 = vmatprep.mubr.msk.bf16.mxu1 %vm1475_vm0, %v1474_v32  ;;  %vm590_vm1 = vcmp.ge.s32.totalorder %v587_v40, %v589_v41 }
  0x77   : > { %508 = vmatpush1.bf16.msra.mxu0 %v1205_v10 }
  0x78   : > { %509 = vmatprep.subr.bf16.mxu0 %v1206_v11 }
  0x7b   : > { %510 = vmatpush1.bf16.msra.mxu0 %v1208_v12 }
  0x7c   : > { %511 = vmatprep.subr.bf16.mxu0 %v1209_v13 }
  0x7f   : > { %512 = vmatpush1.bf16.msra.mxu0 %v1211_v14 }
  0x80   : > { %513 = vmatprep.subr.bf16.mxu0 %v1212_v15 }
  0x83   : > { %514 = vmatpush1.bf16.msra.mxu0 %v1214_v17 }
  0x84   : > { %515 = vmatprep.subr.bf16.mxu0 %v1215_v18 }
  0x87   : > { %516 = vmatpush1.bf16.msra.mxu0 %v1217_v19 }
  0x88   : > { %517 = vmatprep.subr.bf16.mxu0 %v1218_v20 }
  0x8b   : > { %518 = vmatpush1.bf16.msra.mxu0 %v1220_v21 }
  0xf6   : > { %v377_v5 = vpop.xlane.xlu0 %376 }
  0xf7   : > { %v379_v6 = vmul.f32 0.0078125, %v377_v5 }
  0xf9   : > { %v380_v7 = vsub.f32 %v375_v0, %v379_v6 }
  0xfb   : > { %v381_v8 = vmul.f32 %v380_v7, %v380_v7 }
  0xfd   : > { %382 = vadd.xlane.f32.xlu0 %v381_v8 }
 0x186   : > { %v383_v22 = vpop.xlane.xlu0 %382 }
 0x187   : > { %v384_v23 = vmul.f32 0.0078125, %v383_v22 }
 0x189   : > { %v385_v24 = vadd.f32 1e-05, %v384_v23 }
 0x18b   : > { %1221 = vrsqrt.f32 %v385_v24 }
 0x198   : > { %v1222_v25 = vpop.eup %1221 }
 0x199   : > { %v387_v27 = vmul.f32 %v1222_v25, %v380_v7 }
 0x19b   : > { %v395_v29 = vmul.f32 %v963_v26, %v387_v27 }
 0x19d   : > { %v403_v30 = vadd.f32 %v964_v28, %v395_v29 }
 0x19f   : > { %404 = vst [vmem:[%s361_s22] sm:$0xff] %v403_v30  ;;  %v405_v31 = vpack.c.bf16 %v403_v30, %v403_v30 }
 0x1a1   : > { %406 = vst [vmem:[#allocation2] sm:$0xf] %v405_v31  ;;  %536 = vmatmul.mubr.bf16.vlgmr.msra.gmra.mxu0 %v405_v31 }
 0x261   : > { %v537_v33 = vpop.f32.mrf.mxu0 }
 0x262   : > { %v544_v38 = vpack.c.bf16 %v537_v33, %v537_v33 }
 0x263   : > { %v539_v34 = vpop.f32.mrf.mxu0 }
 0x264   : > { %v545_v35 = vpack.c.bf16 %v539_v34, %v539_v34 }
 0x265   : > { %v541_v36 = vpop.f32.mrf.mxu0 }
 0x266   : > { %1013 = vmatpush3.bf16.xpose.msra.mxu1 %v545_v35 }
 0x267   : > { %v542_v37 = vpop.f32.mrf.mxu0 }
 0x26d   : > { %1015 = vmatmul.mubr.bf16.vlgmr.msra.gmra.mxu1 %v544_v38 }
 0x32d   : > { %v580_v42 = vpop.f32.mrf.mxu1 }
 0x32e   : > { %v591_v43 = vsel %vm590_vm1, %v580_v42, 0.0 }
 0x32f   : > { %v592_v44 = vpack.c.bf16 %v591_v43, %v591_v43  ;;  %v1016_v45 = vpop.f32.mrf.mxu1 }
 0x331   : > { %594 = vst.msk [vmem:[#allocation3] sm:$0xf] %vm593_vm2, %v592_v44  ;;  %v583_v46 = vpop.f32.mrf.mxu1 }
 0x333   : > { %v1017_v47 = vpop.f32.mrf.mxu1 }
 0x334 PF: > { %v595_v48 = vld [vmem:[%s1730_s14] sm:$0xff]  ;;  %v1476_v50 = vmov 0   ;;  %v1477_v51 = vmov 0.0   ;;  %v1225_v52 = vld [vmem:[%s1709_s7 + $0x30] sm:$0xff]   ;;  %vm1478_vm3 = vmmov 0   ;;  %v1226_v53 = vld [vmem:[%s1709_s7 + $0x28] sm:$0xff]   ;;  %v597_v60 = vlaneseq }
 0x335   : > { %v1224_v49 = vld [vmem:[%s1709_s7 + $0x38] sm:$0xff]   ;;  %1223 = vset.pattern.permute.xlu0 %v1476_v50  ;;  %1024 = vmatprep.subr.bf16.mxu1 %v1477_v51  ;;  %v1227_v54 = vld [vmem:[%s1709_s7 + $0x20] sm:$0xff]   ;;  %s1928_s14 = sld [smem:[#allocation18_spill]]  ;;  %v1229_v56 = vld [vmem:[%s1709_s7 + $0x10] sm:$0xff]   ;;  %vm613_vm5 = vcmask 1043456   ;;  %vm609_vm6 = vcmask 64512  }
 0x336   : > { %602 = vperm.xlu0 %1223, %v595_v48   ;;  %1025 = vmatpush3.bf16.msra.mxu1 %v1224_v49  ;;  %v1228_v55 = vld [vmem:[%s1709_s7 + $0x18] sm:$0xff]   ;;  %v1230_v57 = vld [vmem:[%s1709_s7 + $0x8] sm:$0xff]   ;;  %v1231_v58 = vld [vmem:[%s1709_s7] sm:$0xff]   ;;  %v598_v61 = vand.u32 127, %v597_v60  ;;  %s1929_s6 = sld [smem:[#allocation23_spill]]  ;;  %s996_s7 = sshll.u32 %s1452_s11, 7 }
 0x337   : > { %1026 = vmatprep.subr.bf16.mxu1 %v1477_v51  ;;  %1018 = vmatprep.subr.bf16.mxu0 %v1477_v51  ;;  %v657_v59 = vld [vmem:[#allocation2] sm:$0xf]  ;;  %s797_s24 = sshll.u32 %s361_s22, 4  ;;  %s1930_s19 = sld [smem:[#allocation31_spill]]  ;;  %s798_s24 = int_to_ptr.vmem [resolvable:$true] %s797_s24 }
 0x338   : > { %1040 = vmatprep.mubr.msk.bf16.mxu1 %vm1478_vm3, %v1477_v51  ;;  %1020 = vmatprep.mubr.msk.bf16.mxu0 %vm1478_vm3, %v1477_v51  ;;  %v608_v4 = vld [vmem:[#allocation3] sm:$0xf]  ;;  %s769_s23 = scalar_lea.sflag [#allocation11], %s359_s15  ;;  %s1286_s2 = scalar_lea.vmem %s798_s24, 128 }
 0x339   : > { %p1287_p12 = scmp.ne.s32.totalorder %s798_s24, %s1286_s2 }
 0x33a   : > { %1027 = vmatpush3.bf16.msra.mxu1 %v1225_v52 }
 0x33b   : > { %1028 = vmatprep.subr.bf16.mxu1 %v1477_v51  ;;  %s981_s1 = sshll.u32 %s1928_s14, 7 }
 0x33c   : > { %v599_v62 = vstv %s981_s1  ;;  %p1931_p11 = scmp.ne.s32.totalorder %s1929_s6, 0  ;;  %s1479_s1 = smov [#allocation10]  }
 0x33d   : > { %v600_v63 = vadd.s32 %v599_v62, %v598_v61  ;;  %s795_s4 = scalar_lea.hbm %s1930_s19, %s996_s7  ;;  %s1290_s18 = sshll.u32 %s1479_s1, 4  ;;  %s1291_s18 = int_to_ptr.vmem [resolvable:$false] %s1290_s18 }
 0x33e   : > { %1029 = vmatpush3.bf16.msra.mxu1 %v1226_v53  ;;  %p1288_p1 = pnand %p1287_p12, %p1931_p11  ;;  %s1292_s10 = scalar_lea.vmem %s1291_s18, 256 }
 0x33f   : > { %1030 = vmatprep.subr.bf16.mxu1 %v1477_v51  ;;  %p1293_p9 = scmp.lt.s32.totalorder %s798_s24, %s1291_s18  ;;  %p1294_p13 = scmp.lt.s32.totalorder %s1292_s10, %s1286_s2 }
 0x340   : > { %p1289_p7 = pneg %p1288_p1 }
 0x341   : > { %p1295_p0 = por %p1294_p13, %p1293_p9 }
 0x342   : > { %1031 = vmatpush3.bf16.msra.mxu1 %v1227_v54 }
 0x343   : > { %1032 = vmatprep.subr.bf16.mxu1 %v1477_v51  ;;  %p1296_p2 = pnand %p1295_p0, %p1289_p7 }
 0x346   : > { %1033 = vmatpush3.bf16.msra.mxu1 %v1228_v55 }
 0x347   : > { %1034 = vmatprep.subr.bf16.mxu1 %v1477_v51 }
 0x34a   : > { %1035 = vmatpush3.bf16.msra.mxu1 %v1229_v56 }
 0x34b   : > { %1036 = vmatprep.subr.bf16.mxu1 %v1477_v51 }
 0x34e   : > { %1037 = vmatpush3.bf16.msra.mxu1 %v1230_v57 }
 0x34f   : > { %1038 = vmatprep.subr.bf16.mxu1 %v1477_v51 }
 0x352   : > { %1039 = vmatpush3.bf16.msra.mxu1 %v1231_v58 }
 0x355   : > { %1041 = vmatmul.mubr.bf16.vlgmr.msra.gmra.mxu1 %v657_v59 }
 0x3b1   : > { %v603_v0 = vpop.permute.xlu0 %602 }
 0x3b2   : > { %vm604_vm4 = vcmp.eq.s32.totalorder %v603_v0, %v600_v63 }
 0x3b3   : > { %v982_v1 = vsel %vm604_vm4, 1.0, %v1477_v51 }
 0x3b4   : > { %v607_v2 = vpack.c.bf16 %v982_v1, %v982_v1 }
 0x3b6   : > { %v615_v3 = vsel %vm613_vm5, %v607_v2, 0 }
 0x3b7   : > { %1019 = vmatpush3.bf16.msra.mxu0 %v615_v3 }
 0x3ba   : > { %1021 = vmatmul.mubr.msk.bf16.vlgmr.msra.gmra.mxu0 %vm609_vm6, %v608_v4 }
 0x3bb   : > { %1299 = shalt.err (!%p1296_p2)
}
 0x3bc   : > { %s1300_s17 = scalar_lea.hbm %s795_s4, 128  ;;  %s1304_s7 = scalar_lea.hbm %s1930_s19, 256 }
 0x3bd   : > { %p1301_p8 = scmp.ne.s32.totalorder %s795_s4, %s1300_s17  ;;  %p1305_p10 = scmp.lt.s32.totalorder %s795_s4, %s1930_s19 }
 0x3be   : > { %p1306_p3 = scmp.lt.s32.totalorder %s1304_s7, %s1300_s17 }
 0x3bf   : > { %p1302_p4 = pnand %p1301_p8, %p1931_p11 }
 0x3c0   : > { %p1307_p5 = por %p1306_p3, %p1305_p10 }
 0x3c1   : > { %p1303_p6 = pneg %p1302_p4 }
 0x3c3   : > { %p1308_p12 = pnand %p1307_p5, %p1303_p6 }
 0x3c5   : > { %1311 = shalt.err (!%p1308_p12)
}
 0x3c6   : > { %1051 = dma.vmem_to_hbm [thread:$0]  (%p1931_p11), %s798_s24, 128, %s795_s4, %s769_s23  }
 0x3c7   : > { %s1932_s18 = sld [smem:[#allocation21_spill]]  ;;  %s994_s10 = sshll.u32 %s1452_s11, 2 }
 0x3c8   : > { %s780_s2 = sadd.s32 %s1928_s14, %s994_s10  ;;  %s1933_s17 = scalar_lea.vmem [#allocation9], %s1719_s16 }
 0x3c9   : > { %s995_s1 = sshll.u32 %s780_s2, 7  ;;  %s784_s15 = sshll.u32 %s1933_s17, 4  ;;  %s1785_s15 = int_to_ptr.vmem [resolvable:$true] %s784_s15 }
 0x3ca   : > { %s1934_s7 = sld [smem:[#allocation30_spill]]  ;;  %s1935_s24 = smov %s1933_s17 }
 0x3cb   : > { %s1936_s11 = sand.u32 1, %s1428_s28   ;;  %s1312_s4 = scalar_lea.vmem %s1785_s15, 128 }
 0x3cc   : > { %s764_s14 = scalar_lea.sflag [#allocation6], %s1936_s11  ;;  %p1313_p11 = scmp.ne.s32.totalorder %s1785_s15, %s1312_s4 }
 0x3cd   : > { %p1937_p1 = scmp.ne.s32.totalorder %s1932_s18, 0  ;;  %s1480_s23 = smov [#allocation9]  }
 0x3ce   : > { %s1316_s21 = sshll.u32 %s1480_s23, 4  ;;  %s1317_s21 = int_to_ptr.vmem [resolvable:$false] %s1316_s21 }
 0x3cf   : > { %p1314_p7 = pnand %p1313_p11, %p1937_p1  ;;  %s1318_s10 = scalar_lea.vmem %s1317_s21, 256 }
 0x3d0   : > { %s1783_s20 = scalar_lea.hbm %s1934_s7, %s995_s1  ;;  %p1319_p13 = scmp.lt.s32.totalorder %s1785_s15, %s1317_s21 }
 0x3d1   : > { %p1315_p9 = pneg %p1314_p7  ;;  %p1320_p0 = scmp.lt.s32.totalorder %s1318_s10, %s1312_s4 }
 0x3d3   : > { %p1321_p2 = por %p1320_p0, %p1319_p13 }
 0x3d5   : > { %p1322_p8 = pnand %p1321_p2, %p1315_p9 }
 0x415   : > { %v756_v5 = vpop.f32.mrf.mxu1 }
 0x417   : > { %v1042_v6 = vpop.f32.mrf.mxu1 }
 0x419   : > { %v759_v7 = vpop.f32.mrf.mxu1 }
 0x41b   : > { %v1043_v8 = vpop.f32.mrf.mxu1 }
 0x47a   : > { %v651_v9 = vpop.f32.mrf.mxu0 }
 0x47b   : > { %v757_v10 = vadd.f32 %v756_v5, %v651_v9 }
 0x47c   : > { %v1022_v11 = vpop.f32.mrf.mxu0 }
 0x47d   : > { %762 = vst [vmem:[%s1935_s24] sm:$0xff] %v757_v10 }
 0x47e   : > { %v654_v12 = vpop.f32.mrf.mxu0 }
 0x47f   : > { %1325 = shalt.err (!%p1322_p8)
}
 0x480   : > { %s1326_s16 = scalar_lea.hbm %s1783_s20, 128  ;;  %s1330_s17 = scalar_lea.hbm %s1934_s7, 1024 }
 0x481   : > { %p1327_p4 = scmp.ne.s32.totalorder %s1783_s20, %s1326_s16  ;;  %p1331_p3 = scmp.lt.s32.totalorder %s1783_s20, %s1934_s7 }
 0x482   : > { %p1332_p5 = scmp.lt.s32.totalorder %s1330_s17, %s1326_s16 }
 0x483   : > { %p1328_p6 = pnand %p1327_p4, %p1937_p1 }
 0x484   : > { %p1333_p12 = por %p1332_p5, %p1331_p3 }
 0x485   : > { %p1329_p10 = pneg %p1328_p6 }
 0x487   : > { %p1334_p11 = pnand %p1333_p12, %p1329_p10 }
 0x489   : > { %1337 = shalt.err (!%p1334_p11)
}
 0x48a   : > { %1050 = dma.vmem_to_hbm [thread:$0]  (%p1937_p1), %s1785_s15, 128, %s1783_s20, %s764_s14   ;;  %v1023_v13 = vpop.f32.mrf.mxu0 }
 0x48b PF: > { %s1938_s24 = sld [smem:[#allocation20_spill]] }
 0x48c   : > { %s1939_s11 = sld [smem:[#allocation17_spill]] }
 0x48d   : > { %s1940_s4 = sld [smem:[#allocation22_spill]] }
 0x491   : > { %p1072_p7 = scmp.ge.s32.totalorder %s1938_s24, 2 }
 0x492   : > { %s809_s23 = sand.u32 1, %s1939_s11  }
 0x493   : > { %p1941_p9 = scmp.ne.s32.totalorder %s1940_s4, 0  ;;  %s810_s21 = scalar_lea.sflag [#allocation6], %s809_s23 }
 0x495   : > { %p1063_p13 = pnand %p1072_p7, %p1941_p9 }
 0x497   : > { %p1064_p0 = pneg %p1063_p13 }
 0x499   : > { %1403 = dma.done.wait (%p1064_p0), %s810_s21, 128  }
 0x49a   : > { %1405 = vsyncadd (%p1064_p0), %s810_s21, 4294967168  ;;  %s1942_s10 = sld [smem:[#allocation16_spill]] }
 0x49b   : > { %s1943_s16 = sld [smem:[#allocation24_spill]] }
 0x4a0   : > { %s818_s2 = sand.u32 1, %s1942_s10  }
 0x4a1   : > { %p1944_p2 = scmp.ne.s32.totalorder %s1943_s16, 0  ;;  %s819_s18 = scalar_lea.sflag [#allocation11], %s818_s2 }
 0x4a3   : > { %p1066_p8 = pnand %p1072_p7, %p1944_p2 }
 0x4a5   : > { %p1067_p4 = pneg %p1066_p8 }
 0x4a7   : > { %1407 = dma.done.wait (%p1067_p4), %s819_s18, 128  }
 0x4a8   : > { %1409 = vsyncadd (%p1067_p4), %s819_s18, 4294967168  ;;  %s28_s14 = sadd.s32 1, %s1938_s24   ;;  %s1946_s20 = smov %s1695_s27 }
 0x4a9   : > { %p1819_p1 = scmp.ge.s32.totalorder %s28_s14, 10   ;;  %s1947_s10 = sld [smem:[#allocation19_spill]] }
 0x4aa   : > { %s1948_s1 = sld [smem:[#allocation25_spill]]  ;;  %s1949_s17 = smov %s1967_s30 }
 0x4ab   : > { %s1950_s24 = smov %s1416_s25  ;;  %s1951_s25 = smov %s1420_s26 }
 0x4ac   : > { %s1952_s26 = smov %s1690_s12  ;;  %s1953_s27 = smov %s1428_s28 }
 0x4ad   : > { %s1954_s28 = smov %s1432_s29  ;;  %s1955_s29 = smov %s1946_s20 }
 0x4ae   : > { %s1956_s30 = smov %s1440_s8  ;;  %s1957_s8 = smov %s1444_s9 }
 0x4af   : > { %s1958_s9 = smov %s1683_s3  ;;  %s1959_s11 = smov %s1460_s13 }
 0x4b0   : > { %s1960_s12 = smov %s1948_s1  ;;  %s1961_s13 = smov %s1949_s17 }
 0x4b1   :  { %27 = sbr.rel (!%p1819_p1) target bundleno = 20 (0x14), region = 121 }
 0x4b6   :  { %824 = vsyncpa [#allocation5], 1 }
 0x4b7   :  { %826 = vsyncpa [#allocation5 + $0x1], 1 }
 0x4b8   :  { %827 = vsyncpa [#allocation8], 1 }
 0x4b9   :  { %829 = vsyncpa [#allocation8 + $0x1], 1 }
 0x4ba   :  { %830 = vsyncpa [#allocation6], 1 }
 0x4bb   :  { %832 = vsyncpa [#allocation6 + $0x1], 1 }
 0x4bc   :  { %833 = vsyncpa [#allocation11], 1 }
 0x4bd   :  { %835 = vsyncpa [#allocation11 + $0x1], 1 }

</bundles_post_ra>
